<compile_context>
chip_gen: v5e
topology: v5e:2x2
jax: 0.10.0
libtpu: 0.0.40
codegen_flags: <defaults>
</compile_context>

<pallas_src>
import functools

import jax
import jax.numpy as jnp
from jax.experimental import pallas as pl
from jax.experimental.pallas import tpu as pltpu

REPARAM_NOISE = 1e-6
HEAD_LANES = 128  # fused [mu | sigma | zero-pad] head width (lane-dense stores)


def _round_up(x, m):
    return (x + m - 1) // m * m


def _actor_fwd_kernel(n_actions, x_ref, w1_ref, b1_ref, w2_ref, b2_ref,
                      wh_ref, bh_ref, head_ref):
    # fc1 + relu (low-precision MXU inputs, f32 accumulation)
    h1 = jnp.dot(x_ref[...], w1_ref[...], preferred_element_type=jnp.float32)
    h1 = jnp.maximum(h1 + b1_ref[...], 0.0)
    # fc2 + relu
    h2 = jnp.dot(h1.astype(w2_ref.dtype), w2_ref[...],
                 preferred_element_type=jnp.float32)
    h2 = jnp.maximum(h2 + b2_ref[...], 0.0)
    # fused [mu | sigma | pad] head: one MXU pass, one 128-lane dense store
    head = jnp.dot(h2.astype(wh_ref.dtype), wh_ref[...],
                   preferred_element_type=jnp.float32) + bh_ref[...]
    # clamp only the sigma lanes (n_actions <= lane < 2*n_actions), in f32
    lane = jax.lax.broadcasted_iota(jnp.int32, head.shape, 1)
    is_sigma = (lane >= n_actions) & (lane < 2 * n_actions)
    head = jnp.where(is_sigma, jnp.clip(head, REPARAM_NOISE, 1.0), head)
    head_ref[...] = head.astype(head_ref.dtype)


def prepare_actor_params(params, compute_dtype=jnp.bfloat16):
    """One-time weight prep, hoisted OUT of the per-step forward path.

    Pads hidden dims to a multiple of 128, fuses the mu / sigma heads into a
    single lane-dense (fc2p, 128) weight, and casts matmul weights to
    `compute_dtype` (biases stay f32).  Call once (or after each optimizer
    step) and reuse the result across forward calls.

    Zero-padded hidden units have zero weights + zero bias (relu(0)=0) and the
    zero-padded head lanes/rows contribute exactly 0, so results are unchanged.
    """
    w1, b1, w2, b2, wmu, bmu, ws, bs = params
    fc1 = w1.shape[1]
    fc2 = w2.shape[1]
    n_actions = wmu.shape[1]
    assert 2 * n_actions <= HEAD_LANES, "head fusion assumes 2*n_actions <= 128"

    fc1p, fc2p = _round_up(fc1, 128), _round_up(fc2, 128)
    w1p = jnp.pad(w1, ((0, 0), (0, fc1p - fc1))).astype(compute_dtype)
    b1p = jnp.pad(b1, ((0, 0), (0, fc1p - fc1)))
    w2p = jnp.pad(w2, ((0, fc1p - fc1), (0, fc2p - fc2))).astype(compute_dtype)
    b2p = jnp.pad(b2, ((0, 0), (0, fc2p - fc2)))
    # fused head: [mu | sigma | zeros] -> 128 output lanes (unmasked stores)
    wh = jnp.zeros((fc2p, HEAD_LANES), jnp.float32)
    wh = wh.at[:fc2, :n_actions].set(wmu)
    wh = wh.at[:fc2, n_actions:2 * n_actions].set(ws)
    wh = wh.astype(compute_dtype)
    bh = jnp.zeros((1, HEAD_LANES), jnp.float32)
    bh = bh.at[:, :n_actions].set(bmu)
    bh = bh.at[:, n_actions:2 * n_actions].set(bs)
    return (w1p, b1p, w2p, b2p, wh, bh)


def actor_forward(state, prepped, n_actions, *, tile_b=2048):
    """Fused MLP forward: fc1 -> relu -> fc2 -> relu -> (mu, clamp(sigma)).

    `prepped` must come from prepare_actor_params() and should be cached by
    the caller (rebuild only when the underlying params change)."""
    w1p, b1p, w2p, b2p, wh, bh = prepped
    B, in_dim = state.shape
    fc1p, fc2p = w1p.shape[1], w2p.shape[1]
    compute_dtype = w1p.dtype
    x = state.astype(compute_dtype)

    # Batch tile: large enough to amortize the ~0.35 us/grid-step overhead,
    # rounded to the sublane pack (16 rows/vreg for bf16, 8 for f32).
    sub = 16 if compute_dtype == jnp.dtype(jnp.bfloat16) else 8
    b_pad = _round_up(B, sub)
    tile_b = min(tile_b, b_pad)
    if tile_b >= b_pad and b_pad >= 2 * sub:
        # A single-step grid would idle one of v7x's two TensorCores: split
        # into >= 2 steps so the "parallel" batch axis feeds both.
        tile_b = _round_up(pl.cdiv(b_pad, 2), sub)
    grid = (pl.cdiv(B, tile_b),)
    # NOTE: ragged last tile -- padded rows compute on unspecified input data
    # but their stores are masked by Pallas, so this is correct (just a bit of
    # wasted MXU work).  Do not "fix" by reading B inside the kernel.

    # Weights / biases: full-array blocks with a constant index_map -> stay
    # resident in VMEM across all grid steps (no re-DMA).
    def resident(a):
        return pl.BlockSpec(a.shape, lambda i: (0,) * a.ndim)

    itemsize = jnp.dtype(compute_dtype).itemsize
    cost = pl.CostEstimate(
        flops=2 * B * (in_dim * fc1p + fc1p * fc2p + fc2p * HEAD_LANES),
        transcendentals=0,
        bytes_accessed=(x.size * itemsize
                        + (w1p.size + w2p.size + wh.size) * itemsize
                        + (b1p.size + b2p.size + bh.size) * 4
                        + B * HEAD_LANES * 4),
    )

    head = pl.pallas_call(
        functools.partial(_actor_fwd_kernel, n_actions),
        out_shape=jax.ShapeDtypeStruct((B, HEAD_LANES), jnp.float32),
        grid_spec=pltpu.PrefetchScalarGridSpec(
            num_scalar_prefetch=0,
            grid=grid,
            in_specs=[
                # state: batch-tiled, double-buffered / streamed.
                pl.BlockSpec((tile_b, in_dim), lambda i: (i, 0)),
                resident(w1p), resident(b1p),
                resident(w2p), resident(b2p),
                resident(wh), resident(bh),
            ],
            out_specs=pl.BlockSpec((tile_b, HEAD_LANES), lambda i: (i, 0)),
        ),
        compiler_params=pltpu.CompilerParams(
            dimension_semantics=("parallel",),      # megacore / v7x 2xTC
            vmem_limit_bytes=32 * 1024 * 1024),     # big tiles also fit v5e
        cost_estimate=cost,
    )(x, w1p, b1p, w2p, b2p, wh, bh)

    mu = head[:, :n_actions]
    sigma = head[:, n_actions:2 * n_actions]
    return mu, sigma


def init_actor_params(key, input_dims, fc1_dims=200, fc2_dims=200, n_actions=2):
    """PyTorch nn.Linear-style init: U[-1/sqrt(fan_in), 1/sqrt(fan_in)].

    Weights stored as (in_features, out_features); biases as (1, out_features)."""
    def linear(k, fan_in, fan_out):
        kw, kb = jax.random.split(k)
        bound = 1.0 / jnp.sqrt(fan_in)
        w = jax.random.uniform(kw, (fan_in, fan_out), jnp.float32, -bound, bound)
        b = jax.random.uniform(kb, (1, fan_out), jnp.float32, -bound, bound)
        return w, b

    k1, k2, k3, k4 = jax.random.split(key, 4)
    w1, b1 = linear(k1, input_dims, fc1_dims)
    w2, b2 = linear(k2, fc1_dims, fc2_dims)
    wmu, bmu = linear(k3, fc2_dims, n_actions)
    ws, bs = linear(k4, fc2_dims, n_actions)
    return (w1, b1, w2, b2, wmu, bmu, ws, bs)


def actor_forward_ref(state, params):
    """Pure-JAX f32 reference for correctness checking."""
    w1, b1, w2, b2, wmu, bmu, ws, bs = params
    h1 = jnp.maximum(state @ w1 + b1, 0.0)
    h2 = jnp.maximum(h1 @ w2 + b2, 0.0)
    mu = h2 @ wmu + bmu
    sigma = jnp.clip(h2 @ ws + bs, REPARAM_NOISE, 1.0)
    return mu, sigma


# TODO(synk): sample_normal (Normal rsample / tanh squashing / log_prob) is
# stochastic host-side glue in the original module; only forward() is in-kernel.

if __name__ == "__main__":
    key = jax.random.PRNGKey(0)
    k_params, k_state = jax.random.split(key)

    batch = 8
    input_dims = 32
    fc1_dims = 200
    fc2_dims = 200
    n_actions = 2

    params = init_actor_params(k_params, input_dims, fc1_dims, fc2_dims, n_actions)
    state = jax.random.normal(k_state, (batch, input_dims), jnp.float32)

    mu_ref, sigma_ref = actor_forward_ref(state, params)

    # f32 compute path: must match the reference tightly (exactness check).
    prepped_f32 = jax.block_until_ready(
        prepare_actor_params(params, compute_dtype=jnp.float32))
    mu32, sigma32 = actor_forward(state, prepped_f32, n_actions)
    mu32, sigma32 = jax.block_until_ready((mu32, sigma32))
    assert mu32.shape == (batch, n_actions) and sigma32.shape == (batch, n_actions)
    assert jnp.allclose(mu32, mu_ref, atol=1e-4, rtol=1e-4)
    assert jnp.allclose(sigma32, sigma_ref, atol=1e-4, rtol=1e-4)

    # Default bf16-MXU path (f32 accumulation), prepped weights cached and the
    # hot forward path jitted: loose tolerance vs f32 reference.
    prepped = jax.block_until_ready(prepare_actor_params(params))
    fwd = jax.jit(lambda s, p: actor_forward(s, p, n_actions))
    mu, sigma = jax.block_until_ready(fwd(state, prepped))
    assert mu.shape == (batch, n_actions) and sigma.shape == (batch, n_actions)
    assert jnp.allclose(mu, mu_ref, atol=5e-2, rtol=5e-2)
    assert jnp.allclose(sigma, sigma_ref, atol=5e-2, rtol=5e-2)
    assert float(sigma.min()) >= REPARAM_NOISE and float(sigma.max()) <= 1.0

    print("KERNEL_OK")
</pallas_src>

<mosaic_0001>
module attributes {stable_mosaic.version = 11 : i64} {
  func.func @_actor_fwd_kernel(%arg0: i32, %arg1: memref<8x32xf32, #tpu.memory_space<vmem>>, %arg2: memref<32x256xf32, #tpu.memory_space<vmem>>, %arg3: memref<1x256xf32, #tpu.memory_space<vmem>>, %arg4: memref<256x256xf32, #tpu.memory_space<vmem>>, %arg5: memref<1x256xf32, #tpu.memory_space<vmem>>, %arg6: memref<256x128xf32, #tpu.memory_space<vmem>>, %arg7: memref<1x128xf32, #tpu.memory_space<vmem>>, %arg8: memref<8x128xf32, #tpu.memory_space<vmem>>) attributes {dimension_semantics = [#tpu.dimension_semantics<parallel>], iteration_bounds = array<i64: 1>, scalar_prefetch = 0 : i64, scratch_operands = 0 : i64, tpu.core_type = #tpu.core_type<tc>, window_params = [{transform_indices = @transform_0, window_bounds = array<i64: 8, 32>}, {pipeline_mode = #tpu.pipeline_mode<synchronous>, transform_indices = @transform_1, window_bounds = array<i64: 32, 256>}, {pipeline_mode = #tpu.pipeline_mode<synchronous>, transform_indices = @transform_2, window_bounds = array<i64: 1, 256>}, {pipeline_mode = #tpu.pipeline_mode<synchronous>, transform_indices = @transform_3, window_bounds = array<i64: 256, 256>}, {pipeline_mode = #tpu.pipeline_mode<synchronous>, transform_indices = @transform_4, window_bounds = array<i64: 1, 256>}, {pipeline_mode = #tpu.pipeline_mode<synchronous>, transform_indices = @transform_5, window_bounds = array<i64: 256, 128>}, {pipeline_mode = #tpu.pipeline_mode<synchronous>, transform_indices = @transform_6, window_bounds = array<i64: 1, 128>}, {transform_indices = @transform_7, window_bounds = array<i64: 8, 128>}]} {
    %c0 = arith.constant 0 : index
    %c0_0 = arith.constant 0 : index
    %0 = vector.load %arg1[%c0, %c0_0] : memref<8x32xf32, #tpu.memory_space<vmem>>, vector<8x32xf32>
    %c0_1 = arith.constant 0 : index
    %c0_2 = arith.constant 0 : index
    %1 = vector.load %arg2[%c0_1, %c0_2] : memref<32x256xf32, #tpu.memory_space<vmem>>, vector<32x256xf32>
    %cst = arith.constant dense<0.000000e+00> : vector<8x256xf32>
    %2 = tpu.matmul %0, %1, %cst {dimension_numbers = #tpu.dot_dimension_numbers<[1], [0], [0], [1], [0, 0, 1, 1], [], []>} : vector<8x32xf32>, vector<32x256xf32>, vector<8x256xf32> -> vector<8x256xf32>
    %c0_3 = arith.constant 0 : index
    %c0_4 = arith.constant 0 : index
    %3 = vector.load %arg3[%c0_3, %c0_4] : memref<1x256xf32, #tpu.memory_space<vmem>>, vector<1x256xf32>
    %4 = vector.broadcast %3 : vector<1x256xf32> to vector<8x256xf32>
    %5 = arith.addf %2, %4 : vector<8x256xf32>
    %cst_5 = arith.constant 0.000000e+00 : f32
    %6 = vector.broadcast %cst_5 : f32 to vector<8x256xf32>
    %7 = arith.maximumf %5, %6 : vector<8x256xf32>
    %c0_6 = arith.constant 0 : index
    %c0_7 = arith.constant 0 : index
    %8 = vector.load %arg4[%c0_6, %c0_7] : memref<256x256xf32, #tpu.memory_space<vmem>>, vector<256x256xf32>
    %cst_8 = arith.constant dense<0.000000e+00> : vector<8x256xf32>
    %9 = tpu.matmul %7, %8, %cst_8 {dimension_numbers = #tpu.dot_dimension_numbers<[1], [0], [0], [1], [0, 0, 1, 1], [], []>} : vector<8x256xf32>, vector<256x256xf32>, vector<8x256xf32> -> vector<8x256xf32>
    %c0_9 = arith.constant 0 : index
    %c0_10 = arith.constant 0 : index
    %10 = vector.load %arg5[%c0_9, %c0_10] : memref<1x256xf32, #tpu.memory_space<vmem>>, vector<1x256xf32>
    %11 = vector.broadcast %10 : vector<1x256xf32> to vector<8x256xf32>
    %12 = arith.addf %9, %11 : vector<8x256xf32>
    %cst_11 = arith.constant 0.000000e+00 : f32
    %13 = vector.broadcast %cst_11 : f32 to vector<8x256xf32>
    %14 = arith.maximumf %12, %13 : vector<8x256xf32>
    %c0_12 = arith.constant 0 : index
    %c0_13 = arith.constant 0 : index
    %15 = vector.load %arg6[%c0_12, %c0_13] : memref<256x128xf32, #tpu.memory_space<vmem>>, vector<256x128xf32>
    %cst_14 = arith.constant dense<0.000000e+00> : vector<8x128xf32>
    %16 = tpu.matmul %14, %15, %cst_14 {dimension_numbers = #tpu.dot_dimension_numbers<[1], [0], [0], [1], [0, 0, 1, 1], [], []>} : vector<8x256xf32>, vector<256x128xf32>, vector<8x128xf32> -> vector<8x128xf32>
    %c0_15 = arith.constant 0 : index
    %c0_16 = arith.constant 0 : index
    %17 = vector.load %arg7[%c0_15, %c0_16] : memref<1x128xf32, #tpu.memory_space<vmem>>, vector<1x128xf32>
    %18 = vector.broadcast %17 : vector<1x128xf32> to vector<8x128xf32>
    %19 = arith.addf %16, %18 : vector<8x128xf32>
    %20 = tpu.iota {dimensions = array<i32: 1>} : vector<8x128xi32>
    %c2_i32 = arith.constant 2 : i32
    %21 = vector.broadcast %c2_i32 : i32 to vector<8x128xi32>
    %22 = arith.cmpi sge, %20, %21 : vector<8x128xi32>
    %c4_i32 = arith.constant 4 : i32
    %23 = vector.broadcast %c4_i32 : i32 to vector<8x128xi32>
    %24 = arith.cmpi slt, %20, %23 : vector<8x128xi32>
    %25 = arith.andi %22, %24 : vector<8x128xi1>
    %cst_17 = arith.constant 9.99999997E-7 : f32
    %cst_18 = arith.constant 1.000000e+00 : f32
    %26 = vector.broadcast %cst_17 : f32 to vector<8x128xf32>
    %27 = arith.maximumf %26, %19 : vector<8x128xf32>
    %28 = vector.broadcast %cst_18 : f32 to vector<8x128xf32>
    %29 = arith.minimumf %28, %27 : vector<8x128xf32>
    %30 = arith.select %25, %29, %19 : vector<8x128xi1>, vector<8x128xf32>
    %c0_19 = arith.constant 0 : index
    %c0_20 = arith.constant 0 : index
    %31 = vector.load %arg8[%c0_19, %c0_20] : memref<8x128xf32, #tpu.memory_space<vmem>>, vector<8x128xf32>
    tpu.vector_store %arg8[%c0_19, %c0_20], %30 {strides = array<i32>} : memref<8x128xf32, #tpu.memory_space<vmem>>, vector<8x128xf32>,
    return
  }
  func.func @transform_0(%arg0: i32) -> (i32, i32) {
    %c0_i32 = arith.constant 0 : i32
    %c0_i32_0 = arith.constant 0 : i32
    return %arg0, %c0_i32 : i32, i32
  }
  func.func @transform_1(%arg0: i32) -> (i32, i32) {
    %c0_i32 = arith.constant 0 : i32
    %c0_i32_0 = arith.constant 0 : i32
    %c0_i32_1 = arith.constant 0 : i32
    return %c0_i32, %c0_i32_0 : i32, i32
  }
  func.func @transform_2(%arg0: i32) -> (i32, i32) {
    %c0_i32 = arith.constant 0 : i32
    %c0_i32_0 = arith.constant 0 : i32
    %c0_i32_1 = arith.constant 0 : i32
    return %c0_i32, %c0_i32_0 : i32, i32
  }
  func.func @transform_3(%arg0: i32) -> (i32, i32) {
    %c0_i32 = arith.constant 0 : i32
    %c0_i32_0 = arith.constant 0 : i32
    %c0_i32_1 = arith.constant 0 : i32
    return %c0_i32, %c0_i32_0 : i32, i32
  }
  func.func @transform_4(%arg0: i32) -> (i32, i32) {
    %c0_i32 = arith.constant 0 : i32
    %c0_i32_0 = arith.constant 0 : i32
    %c0_i32_1 = arith.constant 0 : i32
    return %c0_i32, %c0_i32_0 : i32, i32
  }
  func.func @transform_5(%arg0: i32) -> (i32, i32) {
    %c0_i32 = arith.constant 0 : i32
    %c0_i32_0 = arith.constant 0 : i32
    %c0_i32_1 = arith.constant 0 : i32
    return %c0_i32, %c0_i32_0 : i32, i32
  }
  func.func @transform_6(%arg0: i32) -> (i32, i32) {
    %c0_i32 = arith.constant 0 : i32
    %c0_i32_0 = arith.constant 0 : i32
    %c0_i32_1 = arith.constant 0 : i32
    return %c0_i32, %c0_i32_0 : i32, i32
  }
  func.func @transform_7(%arg0: i32) -> (i32, i32) {
    %c0_i32 = arith.constant 0 : i32
    %c0_i32_0 = arith.constant 0 : i32
    return %arg0, %c0_i32 : i32, i32
  }
}

</mosaic_0001>

<bundles_post_ra>
// kernel: tpu_custom_call.1
= control target key start
LH: loop header
LB: loop body
LE: loop exit
PB: predicated region body
PF: predicated region fallthrough
CT: control target
= control target key end

     0   :  { %12 = vsyncpa [#allocation3], 0  ;;  %s657_s0 = inlined_call_operand.hbm [shape: f32[8,32], index: 0, kind: input, shape index: {}]   ;;  %s658_s1 = inlined_call_operand.hbm [shape: f32[32,256], index: 1, kind: input, shape index: {}]   ;;  %s659_s2 = inlined_call_operand.hbm [shape: f32[1,256], index: 2, kind: input, shape index: {}]   ;;  %s660_s3 = inlined_call_operand.hbm [shape: f32[256,256], index: 3, kind: input, shape index: {}]   ;;  %s661_s4 = inlined_call_operand.vmem [shape: f32[1,256], index: 4, kind: input, shape index: {}]   ;;  %s662_s5 = inlined_call_operand.hbm [shape: f32[256,128], index: 5, kind: input, shape index: {}]   ;;  %s663_s6 = inlined_call_operand.vmem [shape: f32[1,128], index: 6, kind: input, shape index: {}]   ;;  %s664_s7 = inlined_call_operand.hbm [shape: f32[8,128], index: 7, kind: output, shape index: {}]  }
   0x1   :  { %13 = vsyncpa [#allocation6], 0 }
   0x2   :  { %14 = vsyncpa [#allocation9], 0  ;;  %s31_s26 = sshll.u32 %s658_s1, 4  ;;  %s32_s26 = int_to_ptr.hbm [resolvable:$true] %s31_s26 }
   0x3   :  { %15 = vsyncpa [#allocation4], 0  ;;  %s583_s27 = smov [#allocation5]   ;;  %s55_s8 = sshll.u32 %s660_s3, 4  ;;  %s56_s8 = int_to_ptr.hbm [resolvable:$true] %s55_s8 }
   0x4   :  { %s33_s28 = sshll.u32 %s583_s27, 4  ;;  %s584_s9 = smov 256   ;;  %s34_s28 = int_to_ptr.vmem [resolvable:$true] %s33_s28 }
   0x5   :  { %s585_s10 = smov 16   ;;  %s586_s11 = smov [#allocation8]  }
   0x6   :  { %39 = dma.hbm_to_vmem [thread:$0]  %s32_s26, 1024, %s34_s28, [#allocation6], %s584_s9, %s584_s9, %s585_s10  }
   0x7   :  { %s57_s12 = sshll.u32 %s586_s11, 4  ;;  %s21_s15 = sshll.u32 %s657_s0, 4  ;;  %s58_s12 = int_to_ptr.vmem [resolvable:$true] %s57_s12  ;;  %s22_s15 = int_to_ptr.hbm [resolvable:$true] %s21_s15 }
   0x8   :  { %63 = dma.hbm_to_vmem [thread:$0]  %s56_s8, 8192, %s58_s12, [#allocation9], %s584_s9, %s584_s9, %s585_s10  }
   0x9   :  { %s45_s17 = sshll.u32 %s659_s2, 4  ;;  %s587_s18 = smov [#allocation2]   ;;  %s46_s17 = int_to_ptr.hbm [resolvable:$true] %s45_s17 }
   0xa   :  { %s23_s19 = sshll.u32 %s587_s18, 4  ;;  %s588_s3 = smov [#allocation7]   ;;  %s24_s19 = int_to_ptr.vmem [resolvable:$true] %s23_s19 }
   0xb   :  { %26 = dma.hbm_to_vmem [thread:$0]  %s22_s15, 128, %s24_s19, [#allocation3]  }
   0xc   :  { %s47_s20 = sshll.u32 %s588_s3, 4  ;;  %s70_s23 = sshll.u32 %s662_s5, 4  ;;  %s48_s20 = int_to_ptr.vmem [resolvable:$true] %s47_s20  ;;  %s71_s23 = int_to_ptr.hbm [resolvable:$true] %s70_s23 }
   0xd   :  { %50 = dma.hbm_to_vmem [thread:$0]  %s46_s17, 32, %s48_s20, [#allocation6]  }
   0xe   :  { %s589_s0 = smov [#allocation10]   ;;  %s590_s25 = smov 128  }
   0xf   :  { %s72_s24 = sshll.u32 %s589_s0, 4  ;;  %s591_s26 = smov 8   ;;  %s73_s24 = int_to_ptr.vmem [resolvable:$true] %s72_s24 }
  0x10   :  { %78 = dma.hbm_to_vmem [thread:$0]  %s71_s23, 4096, %s73_s24, [#allocation9], %s590_s25, %s590_s25, %s591_s26  }
  0x11   :  { %575 = dma.done.wait [#allocation3], 128  }
  0x12   :  { %576 = vsyncadd [#allocation3], 4294967168 }
  0x13   :  { %577 = dma.done.wait [#allocation6], 1056  }
  0x14   :  { %578 = vsyncadd [#allocation6], 4294966240 }
  0x15   :  { %579 = dma.done.wait [#allocation9], 12288  }
  0x16   :  { %580 = vsyncadd [#allocation9], 4294955008  ;;  %v108_v0 = vld [vmem:[#allocation5 + $0x30] sm:$0xff]  ;;  %v106_v1 = vld [vmem:[#allocation5 + $0x20] sm:$0xff]  ;;  %vm116_vm0 = vcmask 261120   ;;  %s406_s9 = sshll.u32 %s664_s7, 4  ;;  %s407_s9 = int_to_ptr.hbm [resolvable:$true] %s406_s9 }
  0x17   :  { %v109_v2 = vld [vmem:[#allocation5 + $0x38] sm:$0xff]  ;;  %132 = vmatpush.msra.mxu0 %v108_v0  ;;  %v107_v3 = vld [vmem:[#allocation5 + $0x28] sm:$0xff]  ;;  %v104_v4 = vld [vmem:[#allocation5 + $0x10] sm:$0xff] }
  0x18   :  { %152 = vmatpush.msra.mxu1 %v109_v2  ;;  %v105_v5 = vld [vmem:[#allocation5 + $0x18] sm:$0xff]  ;;  %v190_v7 = vld [vmem:[#allocation8 + $0xe0] sm:$0xff]  ;;  %v191_v16 = vld [vmem:[#allocation8 + $0xe8] sm:$0xff] }
  0x19   :  { %133 = vmatpush.msra.mxu0 %v106_v1  ;;  %v192_v6 = vld [vmem:[#allocation8 + $0xf0] sm:$0xff]  ;;  %v102_v8 = vld [vmem:[#allocation5] sm:$0xff]  ;;  %v103_v9 = vld [vmem:[#allocation5 + $0x8] sm:$0xff] }
  0x1a   :  { %153 = vmatpush.msra.mxu1 %v107_v3  ;;  %232 = vmatpush.msra.mxu2 %v192_v6  ;;  %v224_v10 = vld [vmem:[#allocation8 + $0x1f0] sm:$0xff]  ;;  %v193_v12 = vld [vmem:[#allocation8 + $0xf8] sm:$0xff]  ;;  %v222_v15 = vld [vmem:[#allocation8 + $0x1e0] sm:$0xff] }
  0x1b   :  { %134 = vmatpush.msra.mxu0 %v104_v4  ;;  %v101_v11 = vld [vmem:[#allocation2] sm:$0xff]  ;;  %252 = vmatpush.msra.mxu3 %v224_v10  ;;  %v223_v17 = vld [vmem:[#allocation8 + $0x1e8] sm:$0xff]  ;;  %v186_v18 = vld [vmem:[#allocation8 + $0xc0] sm:$0xff] }
  0x1c   :  { %154 = vmatpush.msra.mxu1 %v105_v5  ;;  %233 = vmatpush.msra.mxu2 %v190_v7  ;;  %v225_v13 = vld [vmem:[#allocation8 + $0x1f8] sm:$0xff]  ;;  %v188_v14 = vld [vmem:[#allocation8 + $0xd0] sm:$0xff]  ;;  %v218_v23 = vld [vmem:[#allocation8 + $0x1c0] sm:$0xff] }
  0x1d   :  { %135 = vmatpush.msra.mxu0 %v102_v8  ;;  %v220_v19 = vld [vmem:[#allocation8 + $0x1d0] sm:$0xff]  ;;  %253 = vmatpush.msra.mxu3 %v222_v15  ;;  %v189_v20 = vld [vmem:[#allocation8 + $0xd8] sm:$0xff]  ;;  %v187_v24 = vld [vmem:[#allocation8 + $0xc8] sm:$0xff] }
  0x1e   :  { %155 = vmatpush.msra.mxu1 %v103_v9  ;;  %418 = vmatmul.msk.f32.vlgmr.msra.gmra.mxu0 %vm116_vm0, %v101_v11  ;;  %v221_v21 = vld [vmem:[#allocation8 + $0x1d8] sm:$0xff]  ;;  %v184_v22 = vld [vmem:[#allocation8 + $0xb0] sm:$0xff]  ;;  %v219_v25 = vld [vmem:[#allocation8 + $0x1c8] sm:$0xff] }
  0x1f   :  { %419 = vmatmul.msk.f32.vlgmr.msra.gmra.mxu1 %vm116_vm0, %v101_v11  ;;  %272 = vmatpush.msrb.mxu0 %v193_v12  ;;  %v182_v26 = vld [vmem:[#allocation8 + $0xa0] sm:$0xff]  ;;  %v216_v27 = vld [vmem:[#allocation8 + $0x1b0] sm:$0xff]  ;;  %v185_v28 = vld [vmem:[#allocation8 + $0xb8] sm:$0xff] }
  0x20   :  { %292 = vmatpush.msrb.mxu1 %v225_v13  ;;  %234 = vmatpush.msra.mxu2 %v188_v14  ;;  %v217_v29 = vld [vmem:[#allocation8 + $0x1b8] sm:$0xff]  ;;  %v180_v30 = vld [vmem:[#allocation8 + $0x90] sm:$0xff]  ;;  %v214_v31 = vld [vmem:[#allocation8 + $0x1a0] sm:$0xff] }
  0x21   :  { %273 = vmatpush.msrb.mxu0 %v191_v16  ;;  %254 = vmatpush.msra.mxu3 %v220_v19  ;;  %v183_v32 = vld [vmem:[#allocation8 + $0xa8] sm:$0xff]  ;;  %v178_v34 = vld [vmem:[#allocation8 + $0x80] sm:$0xff]  ;;  %v212_v35 = vld [vmem:[#allocation8 + $0x190] sm:$0xff] }
  0x22   :  { %293 = vmatpush.msrb.mxu1 %v223_v17  ;;  %235 = vmatpush.msra.mxu2 %v186_v18  ;;  %v215_v33 = vld [vmem:[#allocation8 + $0x1a8] sm:$0xff]  ;;  %v181_v36 = vld [vmem:[#allocation8 + $0x98] sm:$0xff]  ;;  %v176_v38 = vld [vmem:[#allocation8 + $0x70] sm:$0xff] }
  0x23   :  { %274 = vmatpush.msrb.mxu0 %v189_v20  ;;  %255 = vmatpush.msra.mxu3 %v218_v23  ;;  %v213_v37 = vld [vmem:[#allocation8 + $0x198] sm:$0xff]  ;;  %v210_v39 = vld [vmem:[#allocation8 + $0x180] sm:$0xff]  ;;  %v179_v40 = vld [vmem:[#allocation8 + $0x88] sm:$0xff] }
  0x24   :  { %294 = vmatpush.msrb.mxu1 %v221_v21  ;;  %236 = vmatpush.msra.mxu2 %v184_v22  ;;  %v211_v41 = vld [vmem:[#allocation8 + $0x188] sm:$0xff]  ;;  %v174_v42 = vld [vmem:[#allocation8 + $0x60] sm:$0xff]  ;;  %v208_v43 = vld [vmem:[#allocation8 + $0x170] sm:$0xff] }
  0x25   :  { %275 = vmatpush.msrb.mxu0 %v187_v24  ;;  %256 = vmatpush.msra.mxu3 %v216_v27  ;;  %v177_v44 = vld [vmem:[#allocation8 + $0x78] sm:$0xff]  ;;  %v172_v46 = vld [vmem:[#allocation8 + $0x50] sm:$0xff]  ;;  %v206_v47 = vld [vmem:[#allocation8 + $0x160] sm:$0xff] }
  0x26   :  { %295 = vmatpush.msrb.mxu1 %v219_v25  ;;  %237 = vmatpush.msra.mxu2 %v182_v26  ;;  %v209_v45 = vld [vmem:[#allocation8 + $0x178] sm:$0xff]  ;;  %v175_v48 = vld [vmem:[#allocation8 + $0x68] sm:$0xff]  ;;  %v170_v50 = vld [vmem:[#allocation8 + $0x40] sm:$0xff] }
  0x27   :  { %276 = vmatpush.msrb.mxu0 %v185_v28  ;;  %257 = vmatpush.msra.mxu3 %v214_v31  ;;  %v207_v49 = vld [vmem:[#allocation8 + $0x168] sm:$0xff]  ;;  %v204_v51 = vld [vmem:[#allocation8 + $0x150] sm:$0xff]  ;;  %v173_v52 = vld [vmem:[#allocation8 + $0x58] sm:$0xff] }
  0x28   :  { %296 = vmatpush.msrb.mxu1 %v217_v29  ;;  %238 = vmatpush.msra.mxu2 %v180_v30  ;;  %v205_v53 = vld [vmem:[#allocation8 + $0x158] sm:$0xff]  ;;  %v168_v54 = vld [vmem:[#allocation8 + $0x30] sm:$0xff]  ;;  %v202_v55 = vld [vmem:[#allocation8 + $0x140] sm:$0xff] }
  0x29   :  { %277 = vmatpush.msrb.mxu0 %v183_v32  ;;  %258 = vmatpush.msra.mxu3 %v212_v35  ;;  %v171_v56 = vld [vmem:[#allocation8 + $0x48] sm:$0xff]  ;;  %v169_v58 = vld [vmem:[#allocation8 + $0x38] sm:$0xff]  ;;  %v166_v59 = vld [vmem:[#allocation8 + $0x20] sm:$0xff] }
  0x2a   :  { %297 = vmatpush.msrb.mxu1 %v215_v33  ;;  %239 = vmatpush.msra.mxu2 %v178_v34  ;;  %v203_v57 = vld [vmem:[#allocation8 + $0x148] sm:$0xff]  ;;  %v200_v60 = vld [vmem:[#allocation8 + $0x130] sm:$0xff]  ;;  %v201_v62 = vld [vmem:[#allocation8 + $0x138] sm:$0xff] }
  0x2b   :  { %278 = vmatpush.msrb.mxu0 %v181_v36  ;;  %259 = vmatpush.msra.mxu3 %v210_v39  ;;  %v167_v61 = vld [vmem:[#allocation8 + $0x28] sm:$0xff]  ;;  %v164_v63 = vld [vmem:[#allocation8 + $0x10] sm:$0xff]  ;;  %v198_v0 = vld [vmem:[#allocation8 + $0x120] sm:$0xff] }
  0x2c   :  { %298 = vmatpush.msrb.mxu1 %v213_v37  ;;  %240 = vmatpush.msra.mxu2 %v176_v38  ;;  %v165_v1 = vld [vmem:[#allocation8 + $0x18] sm:$0xff]  ;;  %v199_v2 = vld [vmem:[#allocation8 + $0x128] sm:$0xff]  ;;  %v162_v3 = vld [vmem:[#allocation8] sm:$0xff] }
  0x2d   :  { %279 = vmatpush.msrb.mxu0 %v179_v40  ;;  %260 = vmatpush.msra.mxu3 %v208_v43  ;;  %v196_v4 = vld [vmem:[#allocation8 + $0x110] sm:$0xff]  ;;  %v163_v5 = vld [vmem:[#allocation8 + $0x8] sm:$0xff]  ;;  %v197_v6 = vld [vmem:[#allocation8 + $0x118] sm:$0xff] }
  0x2e   :  { %299 = vmatpush.msrb.mxu1 %v211_v41  ;;  %241 = vmatpush.msra.mxu2 %v174_v42  ;;  %v194_v7 = vld [vmem:[#allocation8 + $0x100] sm:$0xff]  ;;  %v195_v8 = vld [vmem:[#allocation8 + $0x108] sm:$0xff]  ;;  %v345_v9 = vld [vmem:[#allocation10 + $0xf8] sm:$0xff] }
  0x2f   :  { %280 = vmatpush.msrb.mxu0 %v177_v44  ;;  %261 = vmatpush.msra.mxu3 %v206_v47  ;;  %v344_v10 = vld [vmem:[#allocation10 + $0xf0] sm:$0xff]  ;;  %v329_v11 = vld [vmem:[#allocation10 + $0x78] sm:$0xff]  ;;  %v343_v13 = vld [vmem:[#allocation10 + $0xe8] sm:$0xff] }
  0x30   :  { %300 = vmatpush.msrb.mxu1 %v209_v45  ;;  %242 = vmatpush.msra.mxu2 %v172_v46  ;;  %v328_v12 = vld [vmem:[#allocation10 + $0x70] sm:$0xff]  ;;  %v327_v14 = vld [vmem:[#allocation10 + $0x68] sm:$0xff]  ;;  %v342_v15 = vld [vmem:[#allocation10 + $0xe0] sm:$0xff] }
  0x31   :  { %281 = vmatpush.msrb.mxu0 %v175_v48  ;;  %262 = vmatpush.msra.mxu3 %v204_v51  ;;  %v326_v16 = vld [vmem:[#allocation10 + $0x60] sm:$0xff]  ;;  %v341_v17 = vld [vmem:[#allocation10 + $0xd8] sm:$0xff]  ;;  %v340_v19 = vld [vmem:[#allocation10 + $0xd0] sm:$0xff] }
  0x32   :  { %301 = vmatpush.msrb.mxu1 %v207_v49  ;;  %243 = vmatpush.msra.mxu2 %v170_v50  ;;  %v325_v18 = vld [vmem:[#allocation10 + $0x58] sm:$0xff]  ;;  %v324_v20 = vld [vmem:[#allocation10 + $0x50] sm:$0xff]  ;;  %v339_v21 = vld [vmem:[#allocation10 + $0xc8] sm:$0xff] }
  0x33   :  { %282 = vmatpush.msrb.mxu0 %v173_v52  ;;  %263 = vmatpush.msra.mxu3 %v202_v55  ;;  %v323_v22 = vld [vmem:[#allocation10 + $0x48] sm:$0xff]  ;;  %v338_v23 = vld [vmem:[#allocation10 + $0xc0] sm:$0xff]  ;;  %v337_v25 = vld [vmem:[#allocation10 + $0xb8] sm:$0xff] }
  0x34   :  { %302 = vmatpush.msrb.mxu1 %v205_v53  ;;  %244 = vmatpush.msra.mxu2 %v168_v54  ;;  %v322_v24 = vld [vmem:[#allocation10 + $0x40] sm:$0xff]  ;;  %v321_v26 = vld [vmem:[#allocation10 + $0x38] sm:$0xff]  ;;  %v336_v27 = vld [vmem:[#allocation10 + $0xb0] sm:$0xff] }
  0x35   :  { %283 = vmatpush.msrb.mxu0 %v171_v56  ;;  %264 = vmatpush.msra.mxu3 %v200_v60  ;;  %v335_v28 = vld [vmem:[#allocation10 + $0xa8] sm:$0xff]  ;;  %v110_v29 = vld [vmem:[#allocation7] sm:$0x3]  ;;  %v334_v30 = vld [vmem:[#allocation10 + $0xa0] sm:$0xff] }
  0x36   :  { %303 = vmatpush.msrb.mxu1 %v203_v57  ;;  %245 = vmatpush.msra.mxu2 %v166_v59  ;;  %v112_v31 = vperm.slane %v110_v29, 0  ;;  %v113_v32 = vperm.slane %v110_v29, 1  ;;  %v320_v39 = vld [vmem:[#allocation10 + $0x30] sm:$0xff]  ;;  %v333_v40 = vld [vmem:[#allocation10 + $0x98] sm:$0xff]  ;;  %v319_v41 = vld [vmem:[#allocation10 + $0x28] sm:$0xff] }
  0x37   :  { %284 = vmatpush.msrb.mxu0 %v169_v58  ;;  %265 = vmatpush.msra.mxu3 %v198_v0  ;;  %v332_v42 = vld [vmem:[#allocation10 + $0x90] sm:$0xff]  ;;  %v318_v43 = vld [vmem:[#allocation10 + $0x20] sm:$0xff]  ;;  %v331_v44 = vld [vmem:[#allocation10 + $0x88] sm:$0xff] }
  0x38   :  { %304 = vmatpush.msrb.mxu1 %v201_v62  ;;  %246 = vmatpush.msra.mxu2 %v164_v63  ;;  %v317_v45 = vld [vmem:[#allocation10 + $0x18] sm:$0xff]  ;;  %v330_v46 = vld [vmem:[#allocation10 + $0x80] sm:$0xff]  ;;  %v316_v47 = vld [vmem:[#allocation10 + $0x10] sm:$0xff]  ;;  %v390_v63 = vlaneseq }
  0x39   :  { %285 = vmatpush.msrb.mxu0 %v167_v61  ;;  %266 = vmatpush.msra.mxu3 %v196_v4  ;;  %v315_v48 = vld [vmem:[#allocation10 + $0x8] sm:$0xff]  ;;  %v314_v49 = vld [vmem:[#allocation10] sm:$0xff]  ;;  %v226_v50 = vld [vmem:[%s661_s4] sm:$0x3]  ;;  %s592_s4 = smov [#allocation11]  }
  0x3a   :  { %305 = vmatpush.msrb.mxu1 %v199_v2  ;;  %247 = vmatpush.msra.mxu2 %v162_v3  ;;  %v229_v51 = vperm.slane %v226_v50, 1  ;;  %v228_v56 = vperm.slane %v226_v50, 0  ;;  %v430_v0 = vld [vmem:[%s663_s6] ss:$0 sm:$0xff]  ;;  %s404_s29 = sshll.u32 %s592_s4, 4  ;;  %s405_s29 = int_to_ptr.vmem [resolvable:$true] %s404_s29 }
  0x3b   :  { %286 = vmatpush.msrb.mxu0 %v165_v1  ;;  %267 = vmatpush.msra.mxu3 %v194_v7  ;;  %v391_v1 = vand.u32 127, %v390_v63 }
  0x3c   :  { %306 = vmatpush.msrb.mxu1 %v197_v6  ;;  %350 = vmatpush.msrb.mxu2 %v329_v11 }
  0x3d   :  { %287 = vmatpush.msrb.mxu0 %v163_v5  ;;  %370 = vmatpush.msrb.mxu3 %v345_v9  ;;  %vm392_vm1 = vcmp.ge.s32.totalorder %v391_v1, 2  ;;  %vm393_vm2 = vcmp.lt.s32.totalorder %v391_v1, 4 }
  0x3e   :  { %307 = vmatpush.msrb.mxu1 %v195_v8  ;;  %351 = vmatpush.msrb.mxu2 %v328_v12  ;;  %vm394_vm3 = vmand %vm392_vm1, %vm393_vm2 }
  0x3f   :  { %371 = vmatpush.msrb.mxu3 %v344_v10 }
  0x40   :  { %352 = vmatpush.msrb.mxu2 %v327_v14 }
  0x41   :  { %372 = vmatpush.msrb.mxu3 %v343_v13 }
  0x42   :  { %353 = vmatpush.msrb.mxu2 %v326_v16 }
  0x43   :  { %373 = vmatpush.msrb.mxu3 %v342_v15 }
  0x44   :  { %354 = vmatpush.msrb.mxu2 %v325_v18 }
  0x45   :  { %374 = vmatpush.msrb.mxu3 %v341_v17 }
  0x46   :  { %355 = vmatpush.msrb.mxu2 %v324_v20 }
  0x47   :  { %375 = vmatpush.msrb.mxu3 %v340_v19 }
  0x48   :  { %356 = vmatpush.msrb.mxu2 %v323_v22 }
  0x49   :  { %376 = vmatpush.msrb.mxu3 %v339_v21 }
  0x4a   :  { %357 = vmatpush.msrb.mxu2 %v322_v24 }
  0x4b   :  { %377 = vmatpush.msrb.mxu3 %v338_v23 }
  0x4c   :  { %358 = vmatpush.msrb.mxu2 %v321_v26 }
  0x4d   :  { %378 = vmatpush.msrb.mxu3 %v337_v25 }
  0x4e   :  { %359 = vmatpush.msrb.mxu2 %v320_v39 }
  0x4f   :  { %379 = vmatpush.msrb.mxu3 %v336_v27 }
  0x50   :  { %360 = vmatpush.msrb.mxu2 %v319_v41 }
  0x51   :  { %380 = vmatpush.msrb.mxu3 %v335_v28 }
  0x52   :  { %361 = vmatpush.msrb.mxu2 %v318_v43 }
  0x53   :  { %381 = vmatpush.msrb.mxu3 %v334_v30 }
  0x54   :  { %362 = vmatpush.msrb.mxu2 %v317_v45 }
  0x55   :  { %382 = vmatpush.msrb.mxu3 %v333_v40 }
  0x56   :  { %363 = vmatpush.msrb.mxu2 %v316_v47 }
  0x57   :  { %383 = vmatpush.msrb.mxu3 %v332_v42 }
  0x58   :  { %364 = vmatpush.msrb.mxu2 %v315_v48 }
  0x59   :  { %384 = vmatpush.msrb.mxu3 %v331_v44 }
  0x5a   :  { %365 = vmatpush.msrb.mxu2 %v314_v49 }
  0x5b   :  { %385 = vmatpush.msrb.mxu3 %v330_v46 }
  0x9b   :  { %v137_v33 = vpop.f32.mrf.mxu0 }
  0x9c   :  { %v157_v34 = vpop.f32.mrf.mxu1  ;;  %v138_v35 = vadd.f32 %v137_v33, %v112_v31 }
  0x9d   :  { %v158_v36 = vadd.f32 %v157_v34, %v113_v32 }
  0x9e   :  { %v160_v37 = vmax.f32 %v138_v35, 0.0 }
  0x9f   :  { %v161_v38 = vmax.f32 %v158_v36, 0.0 }
  0xa0   :  { %248 = vmatmul.f32.vlgmr.msra.gmra.mxu2 %v160_v37  ;;  %288 = vmatmul.f32.vlgmr.msrb.gmra.mxu0 %v160_v37 }
  0xa1   :  { %268 = vmatmul.f32.vlgmr.msra.gmra.mxu3 %v161_v38  ;;  %308 = vmatmul.f32.vlgmr.msrb.gmra.mxu1 %v161_v38 }
 0x11d   :  { %v289_v52 = vpop.f32.mrf.mxu0 }
 0x11e   :  { %v290_v53 = vadd.f32 %v289_v52, %v229_v51  ;;  %v309_v54 = vpop.f32.mrf.mxu1 }
 0x120   :  { %v310_v55 = vadd.f32 %v309_v54, %v290_v53 }
 0x122   :  { %v313_v57 = vmax.f32 %v310_v55, 0.0 }
 0x123   :  { %v249_v58 = vpop.f32.mrf.mxu2 }
 0x124   :  { %v250_v59 = vadd.f32 %v249_v58, %v228_v56  ;;  %386 = vmatmul.f32.vlgmr.msrb.gmra.mxu3 %v313_v57  ;;  %v269_v60 = vpop.f32.mrf.mxu3 }
 0x126   :  { %v270_v61 = vadd.f32 %v269_v60, %v250_v59 }
 0x128   :  { %v312_v62 = vmax.f32 %v270_v61, 0.0 }
 0x12a   :  { %366 = vmatmul.f32.vlgmr.msrb.gmra.mxu2 %v312_v62 }
 0x1a7   :  { %v387_v4 = vpop.f32.mrf.mxu3 }
 0x1ad   :  { %v367_v2 = vpop.f32.mrf.mxu2 }
 0x1ae   :  { %v368_v3 = vadd.f32 %v430_v0, %v367_v2 }
 0x1b0   :  { %v388_v5 = vadd.f32 %v387_v4, %v368_v3 }
 0x1b2   :  { %v395_v6 = vmax.f32 %v388_v5, 1e-06 }
 0x1b4   :  { %v396_v7 = vmin.f32 %v395_v6, 1.0 }
 0x1b6   :  { %v397_v8 = vsel %vm394_vm3, %v396_v7, %v388_v5 }
 0x1b7   :  { %398 = vst [vmem:[#allocation11] sm:$0xff] %v397_v8 }
 0x1b8   :  { %409 = dma.vmem_to_hbm [thread:$0]  %s405_s29, 128, %s407_s9, [#allocation4]  }
 0x1b9   :  { %581 = dma.done.wait [#allocation4], 128  }
 0x1ba   :  { %582 = vsyncadd [#allocation4], 4294967168 }
 0x1bb   :  { %414 = vsyncpa [#allocation3], 1 }
 0x1bc   :  { %415 = vsyncpa [#allocation6], 1 }
 0x1bd   :  { %416 = vsyncpa [#allocation9], 1 }
 0x1be   :  { %417 = vsyncpa [#allocation4], 1 }

</bundles_post_ra>
